<compile_context>
chip_gen: v5e
topology: v5e:2x2
jax: 0.10.0
libtpu: 0.0.40
codegen_flags: <defaults>
</compile_context>

<pallas_src>
import functools

import jax
import jax.numpy as jnp
from jax.experimental import pallas as pl
from jax.experimental.pallas import tpu as pltpu


def _round_up(n, m):
    return ((n + m - 1) // m) * m


def _pick_time_chunk(T, max_tc=64):
    """Largest divisor of T that is <= max_tc (keeps blocks exact)."""
    tc = min(T, max_tc)
    while T % tc:
        tc -= 1
    return tc


def _rnn_kernel(x_ref, h0_ref, wih_ref, whh_ref, b_ref, states_ref, h_carry,
                *, Tc, compute_dtype):
    ti = pl.program_id(1)

    # (Re)load the initial hidden state at the start of each batch block.
    @pl.when(ti == 0)
    def _():
        h_carry[...] = h0_ref[...]

    Bt = x_ref.shape[0]
    D = x_ref.shape[2]

    # ---- Phase 1 (time-parallel, off the serial critical path) -------------
    # Input projection + bias for the whole chunk as ONE MXU matmul with
    # M = Bt * Tc.  The result is staged into the output block, which doubles
    # as the pre-activation buffer for phase 2.
    x_flat = x_ref[...].reshape(Bt * Tc, D).astype(compute_dtype)
    pre_x = jnp.dot(x_flat, wih_ref[...], preferred_element_type=jnp.float32)
    pre_x = pre_x + b_ref[...]                       # (Bt*Tc, Hp) + (1, Hp)
    states_ref[...] = pre_x.reshape(Bt, Tc, states_ref.shape[-1])

    # ---- Phase 2 (serial recurrence) ----------------------------------------
    # Per step: one small MXU matmul (h @ W_hh^T) + f32 add + tanh (EUP).
    h = h_carry[...]                                 # f32 carry
    whh = whh_ref[...]
    for s in range(Tc):                              # static, Tc <= 64
        pre_s = states_ref[:, s, :] + jnp.dot(
            h.astype(compute_dtype), whh, preferred_element_type=jnp.float32)
        h = jnp.tanh(pre_s)
        states_ref[:, s, :] = h
    h_carry[...] = h


def rnn_forward(x, h0, w_ih, w_hh, b_ih, b_hh, *,
                tc_max=64, compute_dtype=jnp.float32):
    """x: (B, T, D), h0: (B, H), w_ih: (H, D), w_hh: (H, H), b_*: (H,).

    Returns (states, h_final) with states: (B, T, H), h_final: (B, H).
    Use compute_dtype=jnp.bfloat16 on v6e/v7x for bf16 MXU operands
    (carry / accumulation / tanh stay f32).
    """
    B, T, D = x.shape
    H = h0.shape[-1]
    Hp = _round_up(H, 128)          # lane-dense hidden dim for MXU/vregs/stores
    Tc = _pick_time_chunk(T, tc_max)

    # TODO(synk): for large B on v7x, split the batch into >1 blocks here so the
    # "parallel" grid axis actually shards across both TensorCores.
    Bt = B
    nb = B // Bt

    # Small parameter tensors only: pre-transpose, zero-pad H -> Hp, fuse bias.
    # (No transpose/astype/pad of the big x tensor — it is read in-place.)
    wih_t = jnp.zeros((D, Hp), compute_dtype).at[:, :H].set(
        w_ih.T.astype(compute_dtype))
    whh_t = jnp.zeros((Hp, Hp), compute_dtype).at[:H, :H].set(
        w_hh.T.astype(compute_dtype))
    bias = jnp.zeros((1, Hp), jnp.float32).at[:, :H].set(
        (b_ih + b_hh).astype(jnp.float32))
    h0_p = jnp.zeros((B, Hp), jnp.float32).at[:, :H].set(h0.astype(jnp.float32))

    kernel = functools.partial(_rnn_kernel, Tc=Tc, compute_dtype=compute_dtype)

    states_p = pl.pallas_call(
        kernel,
        out_shape=jax.ShapeDtypeStruct((B, T, Hp), jnp.float32),
        grid_spec=pltpu.PrefetchScalarGridSpec(
            num_scalar_prefetch=0,
            grid=(nb, T // Tc),
            in_specs=[
                pl.BlockSpec((Bt, Tc, D), lambda bi, ti: (bi, ti, 0)),  # x chunk
                pl.BlockSpec((Bt, Hp), lambda bi, ti: (bi, 0)),         # h0
                pl.BlockSpec((D, Hp), lambda bi, ti: (0, 0)),           # W_ih^T
                pl.BlockSpec((Hp, Hp), lambda bi, ti: (0, 0)),          # W_hh^T
                pl.BlockSpec((1, Hp), lambda bi, ti: (0, 0)),           # bias
            ],
            out_specs=pl.BlockSpec((Bt, Tc, Hp), lambda bi, ti: (bi, ti, 0)),
            scratch_shapes=[pltpu.VMEM((Bt, Hp), jnp.float32)],          # h carry
        ),
        compiler_params=pltpu.CompilerParams(
            # batch blocks are independent; the time recurrence is serial.
            dimension_semantics=("parallel", "arbitrary"),
        ),
    )(x, h0_p, wih_t, whh_t, bias)

    states = states_p if Hp == H else states_p[:, :, :H]
    h_final = states[:, -1, :]
    return states, h_final


def _reference(x, h0, w_ih, w_hh, b_ih, b_hh):
    """Pure-JAX reference mirroring the PyTorch module exactly."""
    h = h0
    outs = []
    for t in range(x.shape[1]):
        x_t = x[:, t, :]
        h = jnp.tanh(x_t @ w_ih.T + b_ih + h @ w_hh.T + b_hh)
        outs.append(h)
    return jnp.stack(outs, axis=1), h


if __name__ == "__main__":
    B, T, D, H = 2, 8, 4, 32

    key = jax.random.PRNGKey(0)
    k1, k2, k3, k4, k5, k6, _ = jax.random.split(key, 7)
    bound = 1.0 / jnp.sqrt(H)

    x = jax.random.normal(k1, (B, T, D), dtype=jnp.float32)
    h0 = jax.random.normal(k2, (B, H), dtype=jnp.float32)
    w_ih = jax.random.uniform(k3, (H, D), minval=-bound, maxval=bound, dtype=jnp.float32)
    w_hh = jax.random.uniform(k4, (H, H), minval=-bound, maxval=bound, dtype=jnp.float32)
    b_ih = jax.random.uniform(k5, (H,), minval=-bound, maxval=bound, dtype=jnp.float32)
    b_hh = jax.random.uniform(k6, (H,), minval=-bound, maxval=bound, dtype=jnp.float32)

    states_ref, h_ref = _reference(x, h0, w_ih, w_hh, b_ih, b_hh)

    # f32 MXU operands (exactly matches the PyTorch/JAX reference).
    states, h_final = rnn_forward(x, h0, w_ih, w_hh, b_ih, b_hh)
    jax.block_until_ready((states, h_final))
    assert states.shape == (B, T, H)
    assert h_final.shape == (B, H)
    assert jnp.allclose(states, states_ref, atol=1e-5, rtol=1e-5)
    assert jnp.allclose(h_final, h_ref, atol=1e-5, rtol=1e-5)

    # bf16 MXU operands (v6e/v7x fast path); carry/accumulation stay f32.
    states_bf, h_bf = rnn_forward(x, h0, w_ih, w_hh, b_ih, b_hh,
                                  compute_dtype=jnp.bfloat16)
    jax.block_until_ready((states_bf, h_bf))
    assert jnp.allclose(states_bf, states_ref, atol=3e-2, rtol=3e-2)
    assert jnp.allclose(h_bf, h_ref, atol=3e-2, rtol=3e-2)

    print("KERNEL_OK")
</pallas_src>

<mosaic_0001>
module attributes {stable_mosaic.version = 11 : i64} {
  func.func @_rnn_kernel(%arg0: i32, %arg1: i32, %arg2: memref<2x8x4xf32, #tpu.memory_space<vmem>>, %arg3: memref<2x128xf32, #tpu.memory_space<vmem>>, %arg4: memref<4x128xf32, #tpu.memory_space<vmem>>, %arg5: memref<128x128xf32, #tpu.memory_space<vmem>>, %arg6: memref<1x128xf32, #tpu.memory_space<vmem>>, %arg7: memref<2x8x128xf32, #tpu.memory_space<vmem>>, %arg8: memref<2x128xf32, #tpu.memory_space<vmem>>) attributes {dimension_semantics = [#tpu.dimension_semantics<parallel>, #tpu.dimension_semantics<arbitrary>], iteration_bounds = array<i64: 1, 1>, scalar_prefetch = 0 : i64, scratch_operands = 1 : i64, tpu.core_type = #tpu.core_type<tc>, window_params = [{transform_indices = @transform_0, window_bounds = array<i64: 2, 8, 4>}, {transform_indices = @transform_1, window_bounds = array<i64: 2, 128>}, {pipeline_mode = #tpu.pipeline_mode<synchronous>, transform_indices = @transform_2, window_bounds = array<i64: 4, 128>}, {pipeline_mode = #tpu.pipeline_mode<synchronous>, transform_indices = @transform_3, window_bounds = array<i64: 128, 128>}, {pipeline_mode = #tpu.pipeline_mode<synchronous>, transform_indices = @transform_4, window_bounds = array<i64: 1, 128>}, {transform_indices = @transform_5, window_bounds = array<i64: 2, 8, 128>}]} {
    %c0_i32 = arith.constant 0 : i32
    %0 = arith.cmpi eq, %arg1, %c0_i32 : i32
    %1 = arith.extui %0 : i1 to i32
    %c0_i32_0 = arith.constant 0 : i32
    %2 = arith.cmpi ne, %1, %c0_i32_0 : i32
    scf.if %2 {
      %c0_65 = arith.constant 0 : index
      %c0_66 = arith.constant 0 : index
      %79 = vector.load %arg3[%c0_65, %c0_66] : memref<2x128xf32, #tpu.memory_space<vmem>>, vector<2x128xf32>
      %c0_67 = arith.constant 0 : index
      %c0_68 = arith.constant 0 : index
      %80 = vector.load %arg8[%c0_67, %c0_68] : memref<2x128xf32, #tpu.memory_space<vmem>>, vector<2x128xf32>
      tpu.vector_store %arg8[%c0_67, %c0_68], %79 {strides = array<i32>} : memref<2x128xf32, #tpu.memory_space<vmem>>, vector<2x128xf32>,
    } else {
    }
    %c0 = arith.constant 0 : index
    %c0_1 = arith.constant 0 : index
    %c0_2 = arith.constant 0 : index
    %3 = vector.load %arg2[%c0, %c0_1, %c0_2] : memref<2x8x4xf32, #tpu.memory_space<vmem>>, vector<2x8x4xf32>
    %4 = vector.shape_cast %3 : vector<2x8x4xf32> to vector<16x4xf32>
    %c0_3 = arith.constant 0 : index
    %c0_4 = arith.constant 0 : index
    %5 = vector.load %arg4[%c0_3, %c0_4] : memref<4x128xf32, #tpu.memory_space<vmem>>, vector<4x128xf32>
    %cst = arith.constant dense<0.000000e+00> : vector<16x128xf32>
    %6 = tpu.matmul %4, %5, %cst {dimension_numbers = #tpu.dot_dimension_numbers<[1], [0], [0], [1], [0, 0, 1, 1], [], []>} : vector<16x4xf32>, vector<4x128xf32>, vector<16x128xf32> -> vector<16x128xf32>
    %c0_5 = arith.constant 0 : index
    %c0_6 = arith.constant 0 : index
    %7 = vector.load %arg6[%c0_5, %c0_6] : memref<1x128xf32, #tpu.memory_space<vmem>>, vector<1x128xf32>
    %8 = vector.broadcast %7 : vector<1x128xf32> to vector<16x128xf32>
    %9 = arith.addf %6, %8 : vector<16x128xf32>
    %10 = vector.shape_cast %9 : vector<16x128xf32> to vector<2x8x128xf32>
    %c0_7 = arith.constant 0 : index
    %c0_8 = arith.constant 0 : index
    %c0_9 = arith.constant 0 : index
    %11 = vector.load %arg7[%c0_7, %c0_8, %c0_9] : memref<2x8x128xf32, #tpu.memory_space<vmem>>, vector<2x8x128xf32>
    tpu.vector_store %arg7[%c0_7, %c0_8, %c0_9], %10 {strides = array<i32>} : memref<2x8x128xf32, #tpu.memory_space<vmem>>, vector<2x8x128xf32>,
    %c0_10 = arith.constant 0 : index
    %c0_11 = arith.constant 0 : index
    %12 = vector.load %arg8[%c0_10, %c0_11] : memref<2x128xf32, #tpu.memory_space<vmem>>, vector<2x128xf32>
    %c0_12 = arith.constant 0 : index
    %c0_13 = arith.constant 0 : index
    %13 = vector.load %arg5[%c0_12, %c0_13] : memref<128x128xf32, #tpu.memory_space<vmem>>, vector<128x128xf32>
    %c0_14 = arith.constant 0 : index
    %c0_15 = arith.constant 0 : index
    %c0_16 = arith.constant 0 : index
    %14 = vector.load %arg7[%c0_14, %c0_15, %c0_16] : memref<2x8x128xf32, #tpu.memory_space<vmem>>, vector<2x1x128xf32>
    %15 = vector.shape_cast %14 : vector<2x1x128xf32> to vector<2x128xf32>
    %cst_17 = arith.constant dense<0.000000e+00> : vector<2x128xf32>
    %16 = tpu.matmul %12, %13, %cst_17 {dimension_numbers = #tpu.dot_dimension_numbers<[1], [0], [0], [1], [0, 0, 1, 1], [], []>} : vector<2x128xf32>, vector<128x128xf32>, vector<2x128xf32> -> vector<2x128xf32>
    %17 = arith.addf %15, %16 : vector<2x128xf32>
    %18 = math.tanh %17 : vector<2x128xf32>
    %c0_18 = arith.constant 0 : index
    %c0_19 = arith.constant 0 : index
    %c0_20 = arith.constant 0 : index
    %19 = vector.load %arg7[%c0_18, %c0_19, %c0_20] : memref<2x8x128xf32, #tpu.memory_space<vmem>>, vector<2x1x128xf32>
    %20 = vector.shape_cast %19 : vector<2x1x128xf32> to vector<2x128xf32>
    %21 = vector.shape_cast %18 : vector<2x128xf32> to vector<2x1x128xf32>
    tpu.vector_store %arg7[%c0_18, %c0_19, %c0_20], %21 {strides = array<i32>} : memref<2x8x128xf32, #tpu.memory_space<vmem>>, vector<2x1x128xf32>,
    %c0_21 = arith.constant 0 : index
    %c1 = arith.constant 1 : index
    %c0_22 = arith.constant 0 : index
    %22 = vector.load %arg7[%c0_21, %c1, %c0_22] : memref<2x8x128xf32, #tpu.memory_space<vmem>>, vector<2x1x128xf32>
    %23 = vector.shape_cast %22 : vector<2x1x128xf32> to vector<2x128xf32>
    %cst_23 = arith.constant dense<0.000000e+00> : vector<2x128xf32>
    %24 = tpu.matmul %18, %13, %cst_23 {dimension_numbers = #tpu.dot_dimension_numbers<[1], [0], [0], [1], [0, 0, 1, 1], [], []>} : vector<2x128xf32>, vector<128x128xf32>, vector<2x128xf32> -> vector<2x128xf32>
    %25 = arith.addf %23, %24 : vector<2x128xf32>
    %26 = math.tanh %25 : vector<2x128xf32>
    %c0_24 = arith.constant 0 : index
    %c1_25 = arith.constant 1 : index
    %c0_26 = arith.constant 0 : index
    %27 = vector.load %arg7[%c0_24, %c1_25, %c0_26] : memref<2x8x128xf32, #tpu.memory_space<vmem>>, vector<2x1x128xf32>
    %28 = vector.shape_cast %27 : vector<2x1x128xf32> to vector<2x128xf32>
    %29 = vector.shape_cast %26 : vector<2x128xf32> to vector<2x1x128xf32>
    tpu.vector_store %arg7[%c0_24, %c1_25, %c0_26], %29 {strides = array<i32>} : memref<2x8x128xf32, #tpu.memory_space<vmem>>, vector<2x1x128xf32>,
    %c0_27 = arith.constant 0 : index
    %c2 = arith.constant 2 : index
    %c0_28 = arith.constant 0 : index
    %30 = vector.load %arg7[%c0_27, %c2, %c0_28] : memref<2x8x128xf32, #tpu.memory_space<vmem>>, vector<2x1x128xf32>
    %31 = vector.shape_cast %30 : vector<2x1x128xf32> to vector<2x128xf32>
    %cst_29 = arith.constant dense<0.000000e+00> : vector<2x128xf32>
    %32 = tpu.matmul %26, %13, %cst_29 {dimension_numbers = #tpu.dot_dimension_numbers<[1], [0], [0], [1], [0, 0, 1, 1], [], []>} : vector<2x128xf32>, vector<128x128xf32>, vector<2x128xf32> -> vector<2x128xf32>
    %33 = arith.addf %31, %32 : vector<2x128xf32>
    %34 = math.tanh %33 : vector<2x128xf32>
    %c0_30 = arith.constant 0 : index
    %c2_31 = arith.constant 2 : index
    %c0_32 = arith.constant 0 : index
    %35 = vector.load %arg7[%c0_30, %c2_31, %c0_32] : memref<2x8x128xf32, #tpu.memory_space<vmem>>, vector<2x1x128xf32>
    %36 = vector.shape_cast %35 : vector<2x1x128xf32> to vector<2x128xf32>
    %37 = vector.shape_cast %34 : vector<2x128xf32> to vector<2x1x128xf32>
    tpu.vector_store %arg7[%c0_30, %c2_31, %c0_32], %37 {strides = array<i32>} : memref<2x8x128xf32, #tpu.memory_space<vmem>>, vector<2x1x128xf32>,
    %c0_33 = arith.constant 0 : index
    %c3 = arith.constant 3 : index
    %c0_34 = arith.constant 0 : index
    %38 = vector.load %arg7[%c0_33, %c3, %c0_34] : memref<2x8x128xf32, #tpu.memory_space<vmem>>, vector<2x1x128xf32>
    %39 = vector.shape_cast %38 : vector<2x1x128xf32> to vector<2x128xf32>
    %cst_35 = arith.constant dense<0.000000e+00> : vector<2x128xf32>
    %40 = tpu.matmul %34, %13, %cst_35 {dimension_numbers = #tpu.dot_dimension_numbers<[1], [0], [0], [1], [0, 0, 1, 1], [], []>} : vector<2x128xf32>, vector<128x128xf32>, vector<2x128xf32> -> vector<2x128xf32>
    %41 = arith.addf %39, %40 : vector<2x128xf32>
    %42 = math.tanh %41 : vector<2x128xf32>
    %c0_36 = arith.constant 0 : index
    %c3_37 = arith.constant 3 : index
    %c0_38 = arith.constant 0 : index
    %43 = vector.load %arg7[%c0_36, %c3_37, %c0_38] : memref<2x8x128xf32, #tpu.memory_space<vmem>>, vector<2x1x128xf32>
    %44 = vector.shape_cast %43 : vector<2x1x128xf32> to vector<2x128xf32>
    %45 = vector.shape_cast %42 : vector<2x128xf32> to vector<2x1x128xf32>
    tpu.vector_store %arg7[%c0_36, %c3_37, %c0_38], %45 {strides = array<i32>} : memref<2x8x128xf32, #tpu.memory_space<vmem>>, vector<2x1x128xf32>,
    %c0_39 = arith.constant 0 : index
    %c4 = arith.constant 4 : index
    %c0_40 = arith.constant 0 : index
    %46 = vector.load %arg7[%c0_39, %c4, %c0_40] : memref<2x8x128xf32, #tpu.memory_space<vmem>>, vector<2x1x128xf32>
    %47 = vector.shape_cast %46 : vector<2x1x128xf32> to vector<2x128xf32>
    %cst_41 = arith.constant dense<0.000000e+00> : vector<2x128xf32>
    %48 = tpu.matmul %42, %13, %cst_41 {dimension_numbers = #tpu.dot_dimension_numbers<[1], [0], [0], [1], [0, 0, 1, 1], [], []>} : vector<2x128xf32>, vector<128x128xf32>, vector<2x128xf32> -> vector<2x128xf32>
    %49 = arith.addf %47, %48 : vector<2x128xf32>
    %50 = math.tanh %49 : vector<2x128xf32>
    %c0_42 = arith.constant 0 : index
    %c4_43 = arith.constant 4 : index
    %c0_44 = arith.constant 0 : index
    %51 = vector.load %arg7[%c0_42, %c4_43, %c0_44] : memref<2x8x128xf32, #tpu.memory_space<vmem>>, vector<2x1x128xf32>
    %52 = vector.shape_cast %51 : vector<2x1x128xf32> to vector<2x128xf32>
    %53 = vector.shape_cast %50 : vector<2x128xf32> to vector<2x1x128xf32>
    tpu.vector_store %arg7[%c0_42, %c4_43, %c0_44], %53 {strides = array<i32>} : memref<2x8x128xf32, #tpu.memory_space<vmem>>, vector<2x1x128xf32>,
    %c0_45 = arith.constant 0 : index
    %c5 = arith.constant 5 : index
    %c0_46 = arith.constant 0 : index
    %54 = vector.load %arg7[%c0_45, %c5, %c0_46] : memref<2x8x128xf32, #tpu.memory_space<vmem>>, vector<2x1x128xf32>
    %55 = vector.shape_cast %54 : vector<2x1x128xf32> to vector<2x128xf32>
    %cst_47 = arith.constant dense<0.000000e+00> : vector<2x128xf32>
    %56 = tpu.matmul %50, %13, %cst_47 {dimension_numbers = #tpu.dot_dimension_numbers<[1], [0], [0], [1], [0, 0, 1, 1], [], []>} : vector<2x128xf32>, vector<128x128xf32>, vector<2x128xf32> -> vector<2x128xf32>
    %57 = arith.addf %55, %56 : vector<2x128xf32>
    %58 = math.tanh %57 : vector<2x128xf32>
    %c0_48 = arith.constant 0 : index
    %c5_49 = arith.constant 5 : index
    %c0_50 = arith.constant 0 : index
    %59 = vector.load %arg7[%c0_48, %c5_49, %c0_50] : memref<2x8x128xf32, #tpu.memory_space<vmem>>, vector<2x1x128xf32>
    %60 = vector.shape_cast %59 : vector<2x1x128xf32> to vector<2x128xf32>
    %61 = vector.shape_cast %58 : vector<2x128xf32> to vector<2x1x128xf32>
    tpu.vector_store %arg7[%c0_48, %c5_49, %c0_50], %61 {strides = array<i32>} : memref<2x8x128xf32, #tpu.memory_space<vmem>>, vector<2x1x128xf32>,
    %c0_51 = arith.constant 0 : index
    %c6 = arith.constant 6 : index
    %c0_52 = arith.constant 0 : index
    %62 = vector.load %arg7[%c0_51, %c6, %c0_52] : memref<2x8x128xf32, #tpu.memory_space<vmem>>, vector<2x1x128xf32>
    %63 = vector.shape_cast %62 : vector<2x1x128xf32> to vector<2x128xf32>
    %cst_53 = arith.constant dense<0.000000e+00> : vector<2x128xf32>
    %64 = tpu.matmul %58, %13, %cst_53 {dimension_numbers = #tpu.dot_dimension_numbers<[1], [0], [0], [1], [0, 0, 1, 1], [], []>} : vector<2x128xf32>, vector<128x128xf32>, vector<2x128xf32> -> vector<2x128xf32>
    %65 = arith.addf %63, %64 : vector<2x128xf32>
    %66 = math.tanh %65 : vector<2x128xf32>
    %c0_54 = arith.constant 0 : index
    %c6_55 = arith.constant 6 : index
    %c0_56 = arith.constant 0 : index
    %67 = vector.load %arg7[%c0_54, %c6_55, %c0_56] : memref<2x8x128xf32, #tpu.memory_space<vmem>>, vector<2x1x128xf32>
    %68 = vector.shape_cast %67 : vector<2x1x128xf32> to vector<2x128xf32>
    %69 = vector.shape_cast %66 : vector<2x128xf32> to vector<2x1x128xf32>
    tpu.vector_store %arg7[%c0_54, %c6_55, %c0_56], %69 {strides = array<i32>} : memref<2x8x128xf32, #tpu.memory_space<vmem>>, vector<2x1x128xf32>,
    %c0_57 = arith.constant 0 : index
    %c7 = arith.constant 7 : index
    %c0_58 = arith.constant 0 : index
    %70 = vector.load %arg7[%c0_57, %c7, %c0_58] : memref<2x8x128xf32, #tpu.memory_space<vmem>>, vector<2x1x128xf32>
    %71 = vector.shape_cast %70 : vector<2x1x128xf32> to vector<2x128xf32>
    %cst_59 = arith.constant dense<0.000000e+00> : vector<2x128xf32>
    %72 = tpu.matmul %66, %13, %cst_59 {dimension_numbers = #tpu.dot_dimension_numbers<[1], [0], [0], [1], [0, 0, 1, 1], [], []>} : vector<2x128xf32>, vector<128x128xf32>, vector<2x128xf32> -> vector<2x128xf32>
    %73 = arith.addf %71, %72 : vector<2x128xf32>
    %74 = math.tanh %73 : vector<2x128xf32>
    %c0_60 = arith.constant 0 : index
    %c7_61 = arith.constant 7 : index
    %c0_62 = arith.constant 0 : index
    %75 = vector.load %arg7[%c0_60, %c7_61, %c0_62] : memref<2x8x128xf32, #tpu.memory_space<vmem>>, vector<2x1x128xf32>
    %76 = vector.shape_cast %75 : vector<2x1x128xf32> to vector<2x128xf32>
    %77 = vector.shape_cast %74 : vector<2x128xf32> to vector<2x1x128xf32>
    tpu.vector_store %arg7[%c0_60, %c7_61, %c0_62], %77 {strides = array<i32>} : memref<2x8x128xf32, #tpu.memory_space<vmem>>, vector<2x1x128xf32>,
    %c0_63 = arith.constant 0 : index
    %c0_64 = arith.constant 0 : index
    %78 = vector.load %arg8[%c0_63, %c0_64] : memref<2x128xf32, #tpu.memory_space<vmem>>, vector<2x128xf32>
    tpu.vector_store %arg8[%c0_63, %c0_64], %74 {strides = array<i32>} : memref<2x128xf32, #tpu.memory_space<vmem>>, vector<2x128xf32>,
    return
  }
  func.func @transform_0(%arg0: i32, %arg1: i32) -> (i32, i32, i32) {
    %c0_i32 = arith.constant 0 : i32
    %c0_i32_0 = arith.constant 0 : i32
    return %arg0, %arg1, %c0_i32 : i32, i32, i32
  }
  func.func @transform_1(%arg0: i32, %arg1: i32) -> (i32, i32) {
    %c0_i32 = arith.constant 0 : i32
    %c0_i32_0 = arith.constant 0 : i32
    return %arg0, %c0_i32 : i32, i32
  }
  func.func @transform_2(%arg0: i32, %arg1: i32) -> (i32, i32) {
    %c0_i32 = arith.constant 0 : i32
    %c0_i32_0 = arith.constant 0 : i32
    %c0_i32_1 = arith.constant 0 : i32
    return %c0_i32, %c0_i32_0 : i32, i32
  }
  func.func @transform_3(%arg0: i32, %arg1: i32) -> (i32, i32) {
    %c0_i32 = arith.constant 0 : i32
    %c0_i32_0 = arith.constant 0 : i32
    %c0_i32_1 = arith.constant 0 : i32
    return %c0_i32, %c0_i32_0 : i32, i32
  }
  func.func @transform_4(%arg0: i32, %arg1: i32) -> (i32, i32) {
    %c0_i32 = arith.constant 0 : i32
    %c0_i32_0 = arith.constant 0 : i32
    %c0_i32_1 = arith.constant 0 : i32
    return %c0_i32, %c0_i32_0 : i32, i32
  }
  func.func @transform_5(%arg0: i32, %arg1: i32) -> (i32, i32, i32) {
    %c0_i32 = arith.constant 0 : i32
    %c0_i32_0 = arith.constant 0 : i32
    return %arg0, %arg1, %c0_i32 : i32, i32, i32
  }
}

</mosaic_0001>

<bundles_post_ra>
// kernel: tpu_custom_call.1
= control target key start
LH: loop header
LB: loop body
LE: loop exit
PB: predicated region body
PF: predicated region fallthrough
CT: control target
= control target key end

     0   :  { %10 = vsyncpa [#allocation4], 0  ;;  %s743_s0 = inlined_call_operand.vmem [shape: f32[2,8,4], index: 0, kind: input, shape index: {}]   ;;  %s744_s1 = inlined_call_operand.vmem [shape: f32[2,128], index: 1, kind: input, shape index: {}]   ;;  %s745_s2 = inlined_call_operand.vmem [shape: f32[4,128], index: 2, kind: input, shape index: {}]   ;;  %s746_s3 = inlined_call_operand.hbm [shape: f32[128,128], index: 3, kind: input, shape index: {}]   ;;  %s747_s4 = inlined_call_operand.vmem [shape: f32[1,128], index: 4, kind: input, shape index: {}]   ;;  %s748_s5 = inlined_call_operand.hbm [shape: f32[2,8,128], index: 5, kind: output, shape index: {}]  }
   0x1   :  { %11 = vsyncpa [#allocation5], 0  ;;  %s22_s20 = sshll.u32 %s746_s3, 4  ;;  %s512_s21 = smov [#allocation3]   ;;  %s23_s20 = int_to_ptr.hbm [resolvable:$true] %s22_s20 }
   0x2   :  { %s24_s22 = sshll.u32 %s512_s21, 4  ;;  %s513_s23 = smov 128   ;;  %s25_s22 = int_to_ptr.vmem [resolvable:$true] %s24_s22 }
   0x3   :  { %s514_s24 = smov 8  }
   0x4   :  { %30 = dma.hbm_to_vmem [thread:$0]  %s23_s20, 2048, %s25_s22, [#allocation4], %s513_s23, %s513_s23, %s514_s24  }
   0x5   :  { %508 = dma.done.wait [#allocation4], 2048  }
   0x6   :  { %509 = vsyncadd [#allocation4], 4294965248  ;;  %v552_v0 = vld [vmem:[#allocation3 + $0x78] sm:$0xff]  ;;  %v554_v1 = vld [vmem:[#allocation3 + $0x70] sm:$0xff]  ;;  %vm57_vm0 = vcmask 1043456   ;;  %vm50_vm1 = vcmask 31744  }
   0x7   :  { %105 = vmatpush.msra.mxu1 %v552_v0  ;;  %143 = vmatpush.msra.mxu2 %v552_v0  ;;  %v558_v2 = vld [vmem:[#allocation3 + $0x68] sm:$0xff]  ;;  %v45_v3 = vld [vmem:[%s745_s2] sm:$0xf]  ;;  %v583_v8 = vld [vmem:[#allocation3 + $0x50] sm:$0xff]  ;;  %vm140_vm2 = vcmask 1041409   ;;  %s407_s9 = sshll.u32 %s748_s5, 4  ;;  %s408_s9 = int_to_ptr.hbm [resolvable:$true] %s407_s9 }
   0x8   :  { %180 = vmatpush.msra.mxu3 %v552_v0  ;;  %420 = vmatpush.msk.msra.mxu0 %vm57_vm0, %v45_v3  ;;  %v43_v4 = vld [vmem:[%s743_s0] sm:$0xff]  ;;  %v44_v9 = vld [vmem:[%s743_s0 + $0x8] sm:$0xff]  ;;  %v610_v13 = vld [vmem:[#allocation3 + $0x30] sm:$0xff] }
   0x9   :  { %106 = vmatpush.msra.mxu1 %v554_v1  ;;  %v568_v5 = vld [vmem:[#allocation3 + $0x60] sm:$0xff]  ;;  %421 = vmatmul.msk.f32.vlgmr.msra.gmra.mxu0 %vm50_vm1, %v43_v4  ;;  %v574_v6 = vld [vmem:[#allocation3 + $0x58] sm:$0xff]  ;;  %v592_v10 = vld [vmem:[#allocation3 + $0x48] sm:$0xff] }
   0xa   :  { %144 = vmatpush.msra.mxu2 %v554_v1  ;;  %181 = vmatpush.msra.mxu3 %v554_v1  ;;  %v41_v7 = vld [vmem:[%s744_s1] sm:$0x3]  ;;  %v598_v11 = vld [vmem:[#allocation3 + $0x40] sm:$0xff]  ;;  %v616_v14 = vld [vmem:[#allocation3 + $0x28] sm:$0xff] }
   0xb   :  { %107 = vmatpush.msra.mxu1 %v558_v2  ;;  %217 = vmatpush.msrb.mxu0 %v552_v0  ;;  %42 = vst [vmem:[#allocation2] sm:$0x3] %v41_v7  ;;  %v604_v12 = vld [vmem:[#allocation3 + $0x38] sm:$0xff]  ;;  %v622_v15 = vld [vmem:[#allocation3 + $0x20] sm:$0xff]  ;;  %v634_v17 = vld [vmem:[#allocation3 + $0x10] sm:$0xff] }
   0xc   :  { %145 = vmatpush.msra.mxu2 %v558_v2  ;;  %182 = vmatpush.msra.mxu3 %v558_v2  ;;  %v628_v16 = vld [vmem:[#allocation3 + $0x18] sm:$0xff]  ;;  %v640_v18 = vld [vmem:[#allocation3 + $0x8] sm:$0xff]  ;;  %v646_v19 = vld [vmem:[#allocation3] sm:$0xff] }
   0xd   :  { %108 = vmatpush.msra.mxu1 %v568_v5  ;;  %218 = vmatpush.msrb.mxu0 %v554_v1  ;;  %v427_v21 = vld [vmem:[%s747_s4] ss:$0 sm:$0xff]  ;;  %s515_s4 = smov [#allocation6]  }
   0xe   :  { %146 = vmatpush.msra.mxu2 %v568_v5  ;;  %183 = vmatpush.msra.mxu3 %v568_v5  ;;  %s405_s6 = sshll.u32 %s515_s4, 4  ;;  %s406_s6 = int_to_ptr.vmem [resolvable:$true] %s405_s6 }
   0xf   :  { %109 = vmatpush.msra.mxu1 %v574_v6  ;;  %219 = vmatpush.msrb.mxu0 %v558_v2 }
  0x10   :  { %147 = vmatpush.msra.mxu2 %v574_v6  ;;  %184 = vmatpush.msra.mxu3 %v574_v6 }
  0x11   :  { %110 = vmatpush.msra.mxu1 %v583_v8  ;;  %422 = vmatmul.msk.f32.gmra.mxu0 %vm50_vm1, %v44_v9 }
  0x12   :  { %148 = vmatpush.msra.mxu2 %v583_v8  ;;  %185 = vmatpush.msra.mxu3 %v583_v8  ;;  %v86_v20 = vld [vmem:[#allocation2] sm:$0x3] }
  0x13   :  { %111 = vmatpush.msra.mxu1 %v592_v10  ;;  %220 = vmatpush.msrb.mxu0 %v568_v5 }
  0x14   :  { %149 = vmatpush.msra.mxu2 %v592_v10  ;;  %186 = vmatpush.msra.mxu3 %v592_v10 }
  0x15   :  { %112 = vmatpush.msra.mxu1 %v598_v11  ;;  %221 = vmatpush.msrb.mxu0 %v574_v6 }
  0x16   :  { %150 = vmatpush.msra.mxu2 %v598_v11  ;;  %187 = vmatpush.msra.mxu3 %v598_v11 }
  0x17   :  { %113 = vmatpush.msra.mxu1 %v604_v12  ;;  %222 = vmatpush.msrb.mxu0 %v583_v8 }
  0x18   :  { %151 = vmatpush.msra.mxu2 %v604_v12  ;;  %188 = vmatpush.msra.mxu3 %v604_v12 }
  0x19   :  { %114 = vmatpush.msra.mxu1 %v610_v13  ;;  %223 = vmatpush.msrb.mxu0 %v592_v10 }
  0x1a   :  { %152 = vmatpush.msra.mxu2 %v610_v13  ;;  %189 = vmatpush.msra.mxu3 %v610_v13 }
  0x1b   :  { %115 = vmatpush.msra.mxu1 %v616_v14  ;;  %224 = vmatpush.msrb.mxu0 %v598_v11 }
  0x1c   :  { %153 = vmatpush.msra.mxu2 %v616_v14  ;;  %190 = vmatpush.msra.mxu3 %v616_v14 }
  0x1d   :  { %116 = vmatpush.msra.mxu1 %v622_v15  ;;  %225 = vmatpush.msrb.mxu0 %v604_v12 }
  0x1e   :  { %154 = vmatpush.msra.mxu2 %v622_v15  ;;  %191 = vmatpush.msra.mxu3 %v622_v15 }
  0x1f   :  { %117 = vmatpush.msra.mxu1 %v628_v16  ;;  %226 = vmatpush.msrb.mxu0 %v610_v13 }
  0x20   :  { %155 = vmatpush.msra.mxu2 %v628_v16  ;;  %192 = vmatpush.msra.mxu3 %v628_v16 }
  0x21   :  { %118 = vmatpush.msra.mxu1 %v634_v17  ;;  %227 = vmatpush.msrb.mxu0 %v616_v14 }
  0x22   :  { %156 = vmatpush.msra.mxu2 %v634_v17  ;;  %193 = vmatpush.msra.mxu3 %v634_v17 }
  0x23   :  { %119 = vmatpush.msra.mxu1 %v640_v18  ;;  %228 = vmatpush.msrb.mxu0 %v622_v15 }
  0x24   :  { %157 = vmatpush.msra.mxu2 %v640_v18  ;;  %194 = vmatpush.msra.mxu3 %v640_v18 }
  0x25   :  { %120 = vmatpush.msra.mxu1 %v646_v19  ;;  %229 = vmatpush.msrb.mxu0 %v628_v16 }
  0x26   :  { %121 = vmatmul.f32.vlgmr.msra.gmra.mxu1 %v86_v20  ;;  %158 = vmatpush.msra.mxu2 %v646_v19 }
  0x27   :  { %195 = vmatpush.msra.mxu3 %v646_v19  ;;  %254 = vmatpush.msrb.mxu1 %v552_v0 }
  0x28   :  { %291 = vmatpush.msrb.mxu2 %v552_v0  ;;  %230 = vmatpush.msrb.mxu0 %v634_v17 }
  0x29   :  { %328 = vmatpush.msrb.mxu3 %v552_v0  ;;  %255 = vmatpush.msrb.mxu1 %v554_v1 }
  0x2a   :  { %292 = vmatpush.msrb.mxu2 %v554_v1  ;;  %231 = vmatpush.msrb.mxu0 %v640_v18 }
  0x2b   :  { %329 = vmatpush.msrb.mxu3 %v554_v1  ;;  %256 = vmatpush.msrb.mxu1 %v558_v2 }
  0x2c   :  { %293 = vmatpush.msrb.mxu2 %v558_v2  ;;  %232 = vmatpush.msrb.mxu0 %v646_v19 }
  0x2d   :  { %330 = vmatpush.msrb.mxu3 %v558_v2  ;;  %257 = vmatpush.msrb.mxu1 %v568_v5 }
  0x2e   :  { %294 = vmatpush.msrb.mxu2 %v568_v5  ;;  %365 = vmatpush.msra.mxu0 %v552_v0 }
  0x2f   :  { %331 = vmatpush.msrb.mxu3 %v568_v5  ;;  %258 = vmatpush.msrb.mxu1 %v574_v6 }
  0x30   :  { %295 = vmatpush.msrb.mxu2 %v574_v6  ;;  %366 = vmatpush.msra.mxu0 %v554_v1 }
  0x31   :  { %332 = vmatpush.msrb.mxu3 %v574_v6  ;;  %259 = vmatpush.msrb.mxu1 %v583_v8 }
  0x32   :  { %296 = vmatpush.msrb.mxu2 %v583_v8  ;;  %367 = vmatpush.msra.mxu0 %v558_v2 }
  0x33   :  { %333 = vmatpush.msrb.mxu3 %v583_v8  ;;  %260 = vmatpush.msrb.mxu1 %v592_v10 }
  0x34   :  { %297 = vmatpush.msrb.mxu2 %v592_v10  ;;  %368 = vmatpush.msra.mxu0 %v568_v5 }
  0x35   :  { %334 = vmatpush.msrb.mxu3 %v592_v10  ;;  %261 = vmatpush.msrb.mxu1 %v598_v11 }
  0x36   :  { %298 = vmatpush.msrb.mxu2 %v598_v11  ;;  %369 = vmatpush.msra.mxu0 %v574_v6 }
  0x37   :  { %335 = vmatpush.msrb.mxu3 %v598_v11  ;;  %262 = vmatpush.msrb.mxu1 %v604_v12 }
  0x38   :  { %299 = vmatpush.msrb.mxu2 %v604_v12  ;;  %370 = vmatpush.msra.mxu0 %v583_v8 }
  0x39   :  { %336 = vmatpush.msrb.mxu3 %v604_v12  ;;  %263 = vmatpush.msrb.mxu1 %v610_v13 }
  0x3a   :  { %300 = vmatpush.msrb.mxu2 %v610_v13  ;;  %371 = vmatpush.msra.mxu0 %v592_v10 }
  0x3b   :  { %337 = vmatpush.msrb.mxu3 %v610_v13  ;;  %264 = vmatpush.msrb.mxu1 %v616_v14 }
  0x3c   :  { %301 = vmatpush.msrb.mxu2 %v616_v14  ;;  %372 = vmatpush.msra.mxu0 %v598_v11 }
  0x3d   :  { %338 = vmatpush.msrb.mxu3 %v616_v14  ;;  %265 = vmatpush.msrb.mxu1 %v622_v15 }
  0x3e   :  { %302 = vmatpush.msrb.mxu2 %v622_v15  ;;  %373 = vmatpush.msra.mxu0 %v604_v12 }
  0x3f   :  { %339 = vmatpush.msrb.mxu3 %v622_v15  ;;  %266 = vmatpush.msrb.mxu1 %v628_v16 }
  0x40   :  { %303 = vmatpush.msrb.mxu2 %v628_v16  ;;  %374 = vmatpush.msra.mxu0 %v610_v13 }
  0x41   :  { %340 = vmatpush.msrb.mxu3 %v628_v16  ;;  %267 = vmatpush.msrb.mxu1 %v634_v17 }
  0x42   :  { %304 = vmatpush.msrb.mxu2 %v634_v17  ;;  %375 = vmatpush.msra.mxu0 %v616_v14 }
  0x43   :  { %341 = vmatpush.msrb.mxu3 %v634_v17  ;;  %268 = vmatpush.msrb.mxu1 %v640_v18 }
  0x44   :  { %305 = vmatpush.msrb.mxu2 %v640_v18  ;;  %376 = vmatpush.msra.mxu0 %v622_v15 }
  0x45   :  { %342 = vmatpush.msrb.mxu3 %v640_v18  ;;  %269 = vmatpush.msrb.mxu1 %v646_v19 }
  0x46   :  { %306 = vmatpush.msrb.mxu2 %v646_v19  ;;  %377 = vmatpush.msra.mxu0 %v628_v16 }
  0x47   :  { %343 = vmatpush.msrb.mxu3 %v646_v19 }
  0x48   :  { %378 = vmatpush.msra.mxu0 %v634_v17 }
  0x4a   :  { %379 = vmatpush.msra.mxu0 %v640_v18 }
  0x4c   :  { %380 = vmatpush.msra.mxu0 %v646_v19 }
  0x86   :  { %v78_v22 = vpop.f32.mrf.mxu0 }
  0x87   :  { %v79_v23 = vadd.f32 %v427_v21, %v78_v22 }
  0x89   :  { %84 = vst [vmem:[#allocation6] sm:$0xff] %v79_v23 }
  0x8e   :  { %v81_v24 = vpop.f32.mrf.mxu0 }
  0x8f   :  { %v82_v25 = vadd.f32 %v427_v21, %v81_v24 }
  0x90   :  { %v103_v26 = vld [vmem:[#allocation6] sm:$0x1]  ;;  %v135_v36 = vld [vmem:[#allocation6 + $0x1] sm:$0x1]  ;;  %v173_v46 = vld [vmem:[#allocation6 + $0x2] sm:$0x1] }
  0x91   :  { %85 = vst [vmem:[#allocation6 + $0x8] sm:$0xff] %v82_v25  ;;  %v210_v56 = vld [vmem:[#allocation6 + $0x3] sm:$0x1]  ;;  %v247_v2 = vld [vmem:[#allocation6 + $0x4] sm:$0x1] }
  0x92   :  { %v284_v12 = vld [vmem:[#allocation6 + $0x5] sm:$0x1]  ;;  %v321_v22 = vld [vmem:[#allocation6 + $0x6] sm:$0x1] }
  0x98   :  { %v104_v27 = vld [vmem:[#allocation6 + $0x8] sm:$0x1]  ;;  %v136_v40 = vld [vmem:[#allocation6 + $0x9] sm:$0x1]  ;;  %v174_v50 = vld [vmem:[#allocation6 + $0xa] sm:$0x1] }
  0x99   :  { %v211_v60 = vld [vmem:[#allocation6 + $0xb] sm:$0x1]  ;;  %v248_v6 = vld [vmem:[#allocation6 + $0xc] sm:$0x1]  ;;  %v285_v16 = vld [vmem:[#allocation6 + $0xd] sm:$0x1] }
  0xa3   :  { %v122_v28 = vpop.f32.mrf.mxu1 }
  0xa4   :  { %v126_v29 = vrot.slane %v122_v28, 1  ;;  %v129_v30 = vadd.f32 %v122_v28, %v103_v26  ;;  %v322_v26 = vld [vmem:[#allocation6 + $0xe] sm:$0x1] }
  0xa6   :  { %v130_v31 = vadd.f32 %v126_v29, %v104_v27  ;;  %428 = vtanh.f32 %v129_v30 }
  0xa8   :  { %430 = vtanh.f32 %v130_v31 }
  0xac   :  { %v429_v32 = vpop.eup %428 }
  0xad   :  { %133 = vst [vmem:[#allocation6] sm:$0x1] %v429_v32 }
  0xae   :  { %v431_v33 = vpop.eup %430 }
  0xaf   :  { %134 = vst [vmem:[#allocation6 + $0x8] sm:$0x1] %v431_v33  ;;  %v139_v34 = vrot.slane %v431_v33, 7 }
  0xb1   :  { %v141_v35 = vsel %vm140_vm2, %v139_v34, %v429_v32  ;;  %v358_v32 = vld [vmem:[#allocation6 + $0x7] sm:$0x1] }
  0xb2   :  { %159 = vmatmul.f32.vlgmr.msra.gmra.mxu2 %v141_v35 }
 0x135   :  { %v160_v37 = vpop.f32.mrf.mxu2 }
 0x136   :  { %v164_v38 = vrot.slane %v160_v37, 1  ;;  %v167_v39 = vadd.f32 %v160_v37, %v135_v36  ;;  %v359_v36 = vld [vmem:[#allocation6 + $0xf] sm:$0x1] }
 0x138   :  { %v168_v41 = vadd.f32 %v164_v38, %v136_v40  ;;  %432 = vtanh.f32 %v167_v39 }
 0x13a   :  { %434 = vtanh.f32 %v168_v41 }
 0x13e   :  { %v433_v42 = vpop.eup %432 }
 0x13f   :  { %171 = vst [vmem:[#allocation6 + $0x1] sm:$0x1] %v433_v42 }
 0x140   :  { %v435_v43 = vpop.eup %434 }
 0x141   :  { %172 = vst [vmem:[#allocation6 + $0x9] sm:$0x1] %v435_v43  ;;  %v177_v44 = vrot.slane %v435_v43, 7 }
 0x143   :  { %v178_v45 = vsel %vm140_vm2, %v177_v44, %v433_v42 }
 0x144   :  { %196 = vmatmul.f32.vlgmr.msra.gmra.mxu3 %v178_v45 }
 0x1c7   :  { %v197_v47 = vpop.f32.mrf.mxu3 }
 0x1c8   :  { %v201_v48 = vrot.slane %v197_v47, 1  ;;  %v204_v49 = vadd.f32 %v197_v47, %v173_v46 }
 0x1ca   :  { %v205_v51 = vadd.f32 %v201_v48, %v174_v50  ;;  %436 = vtanh.f32 %v204_v49 }
 0x1cc   :  { %438 = vtanh.f32 %v205_v51 }
 0x1d0   :  { %v437_v52 = vpop.eup %436 }
 0x1d1   :  { %208 = vst [vmem:[#allocation6 + $0x2] sm:$0x1] %v437_v52 }
 0x1d2   :  { %v439_v53 = vpop.eup %438 }
 0x1d3   :  { %209 = vst [vmem:[#allocation6 + $0xa] sm:$0x1] %v439_v53  ;;  %v214_v54 = vrot.slane %v439_v53, 7 }
 0x1d5   :  { %v215_v55 = vsel %vm140_vm2, %v214_v54, %v437_v52 }
 0x1d6   :  { %233 = vmatmul.f32.vlgmr.msrb.gmra.mxu0 %v215_v55 }
 0x253   :  { %v234_v57 = vpop.f32.mrf.mxu0 }
 0x254   :  { %v238_v58 = vrot.slane %v234_v57, 1  ;;  %v241_v59 = vadd.f32 %v234_v57, %v210_v56 }
 0x256   :  { %v242_v61 = vadd.f32 %v238_v58, %v211_v60  ;;  %440 = vtanh.f32 %v241_v59 }
 0x258   :  { %442 = vtanh.f32 %v242_v61 }
 0x25c   :  { %v441_v62 = vpop.eup %440 }
 0x25d   :  { %245 = vst [vmem:[#allocation6 + $0x3] sm:$0x1] %v441_v62 }
 0x25e   :  { %v443_v63 = vpop.eup %442 }
 0x25f   :  { %246 = vst [vmem:[#allocation6 + $0xb] sm:$0x1] %v443_v63  ;;  %v251_v0 = vrot.slane %v443_v63, 7 }
 0x261   :  { %v252_v1 = vsel %vm140_vm2, %v251_v0, %v441_v62 }
 0x262   :  { %270 = vmatmul.f32.vlgmr.msrb.gmra.mxu1 %v252_v1 }
 0x2df   :  { %v271_v3 = vpop.f32.mrf.mxu1 }
 0x2e0   :  { %v275_v4 = vrot.slane %v271_v3, 1  ;;  %v278_v5 = vadd.f32 %v271_v3, %v247_v2 }
 0x2e2   :  { %v279_v7 = vadd.f32 %v275_v4, %v248_v6  ;;  %444 = vtanh.f32 %v278_v5 }
 0x2e4   :  { %446 = vtanh.f32 %v279_v7 }
 0x2e8   :  { %v445_v8 = vpop.eup %444 }
 0x2e9   :  { %282 = vst [vmem:[#allocation6 + $0x4] sm:$0x1] %v445_v8 }
 0x2ea   :  { %v447_v9 = vpop.eup %446 }
 0x2eb   :  { %283 = vst [vmem:[#allocation6 + $0xc] sm:$0x1] %v447_v9  ;;  %v288_v10 = vrot.slane %v447_v9, 7 }
 0x2ed   :  { %v289_v11 = vsel %vm140_vm2, %v288_v10, %v445_v8 }
 0x2ee   :  { %307 = vmatmul.f32.vlgmr.msrb.gmra.mxu2 %v289_v11 }
 0x371   :  { %v308_v13 = vpop.f32.mrf.mxu2 }
 0x372   :  { %v312_v14 = vrot.slane %v308_v13, 1  ;;  %v315_v15 = vadd.f32 %v308_v13, %v284_v12 }
 0x374   :  { %v316_v17 = vadd.f32 %v312_v14, %v285_v16  ;;  %448 = vtanh.f32 %v315_v15 }
 0x376   :  { %450 = vtanh.f32 %v316_v17 }
 0x37a   :  { %v449_v18 = vpop.eup %448 }
 0x37b   :  { %319 = vst [vmem:[#allocation6 + $0x5] sm:$0x1] %v449_v18 }
 0x37c   :  { %v451_v19 = vpop.eup %450 }
 0x37d   :  { %320 = vst [vmem:[#allocation6 + $0xd] sm:$0x1] %v451_v19  ;;  %v325_v20 = vrot.slane %v451_v19, 7 }
 0x37f   :  { %v326_v21 = vsel %vm140_vm2, %v325_v20, %v449_v18 }
 0x380   :  { %344 = vmatmul.f32.vlgmr.msrb.gmra.mxu3 %v326_v21 }
 0x403   :  { %v345_v23 = vpop.f32.mrf.mxu3 }
 0x404   :  { %v349_v24 = vrot.slane %v345_v23, 1  ;;  %v352_v25 = vadd.f32 %v345_v23, %v321_v22 }
 0x406   :  { %v353_v27 = vadd.f32 %v349_v24, %v322_v26  ;;  %452 = vtanh.f32 %v352_v25 }
 0x408   :  { %454 = vtanh.f32 %v353_v27 }
 0x40c   :  { %v453_v28 = vpop.eup %452 }
 0x40d   :  { %356 = vst [vmem:[#allocation6 + $0x6] sm:$0x1] %v453_v28 }
 0x40e   :  { %v455_v29 = vpop.eup %454 }
 0x40f   :  { %357 = vst [vmem:[#allocation6 + $0xe] sm:$0x1] %v455_v29  ;;  %v362_v30 = vrot.slane %v455_v29, 7 }
 0x411   :  { %v363_v31 = vsel %vm140_vm2, %v362_v30, %v453_v28 }
 0x412   :  { %381 = vmatmul.f32.vlgmr.msra.gmra.mxu0 %v363_v31 }
 0x48f   :  { %v382_v33 = vpop.f32.mrf.mxu0 }
 0x490   :  { %v386_v34 = vrot.slane %v382_v33, 1  ;;  %v389_v35 = vadd.f32 %v382_v33, %v358_v32 }
 0x492   :  { %v390_v37 = vadd.f32 %v386_v34, %v359_v36  ;;  %456 = vtanh.f32 %v389_v35 }
 0x494   :  { %458 = vtanh.f32 %v390_v37 }
 0x498   :  { %v457_v38 = vpop.eup %456 }
 0x499   :  { %393 = vst [vmem:[#allocation6 + $0x7] sm:$0x1] %v457_v38 }
 0x49a   :  { %v459_v39 = vpop.eup %458 }
 0x49b   :  { %394 = vst [vmem:[#allocation6 + $0xf] sm:$0x1] %v459_v39  ;;  %v397_v40 = vrot.slane %v459_v39, 7 }
 0x49c   :  { %413 = dma.vmem_to_hbm [thread:$0]  %s406_s6, 256, %s408_s9, [#allocation5], %s513_s23, %s513_s23, %s514_s24  }
 0x49d   :  { %v398_v41 = vsel %vm140_vm2, %v397_v40, %v457_v38 }
 0x49e   :  { %400 = vst [vmem:[#allocation2] sm:$0x3] %v398_v41 }
 0x49f   :  { %510 = dma.done.wait [#allocation5], 256  }
 0x4a0   :  { %511 = vsyncadd [#allocation5], 4294967040 }
 0x4a1   :  { %418 = vsyncpa [#allocation4], 1 }
 0x4a2   :  { %419 = vsyncpa [#allocation5], 1 }

</bundles_post_ra>
